<compile_context>
chip_gen: v6e
topology: v6e:2x2x1
jax: 0.10.0
libtpu: 0.0.40
codegen_flags: <defaults>
</compile_context>

<pallas_src>
import functools

import jax
import jax.numpy as jnp
from jax.experimental import pallas as pl
from jax.experimental.pallas import tpu as pltpu


def _round_up(x, m):
    return (x + m - 1) // m * m


def icm_kernel(
    act_ref,                          # VMEM (B, 1) int32 actions
    s1_ref, s2_ref,                   # VMEM (B, obs)
    wf_ref, bf_ref,                   # feature net
    wfw1p_ref, wact_ref, bfw1_ref,    # forward model layer 1 (split weights)
    wfw2_ref, bfw2_ref,               # forward model layer 2
    winva_ref, winvb_ref, binv1_ref,  # inverse model layer 1 (split weights)
    winv2p_ref, binv2p_ref,           # inverse model layer 2 (lane-padded)
    out_ref,                          # VMEM (B, OUT) packed [act_hat | mse]
    *, action_dim,
):
    B = out_ref.shape[0]
    out_lanes = out_ref.shape[1]

    # ---- feature net: phi_i = relu(s_i @ Wf + bf), two tiny matmuls --------
    bf = bf_ref[...]
    phi1 = jnp.maximum(
        jnp.dot(s1_ref[...], wf_ref[...], preferred_element_type=jnp.float32)
        + bf, 0.0)
    phi2 = jnp.maximum(
        jnp.dot(s2_ref[...], wf_ref[...], preferred_element_type=jnp.float32)
        + bf, 0.0)

    # ---- one-hot(act) @ W_act, entirely in-register (replaces gather) ------
    lane_a = jax.lax.broadcasted_iota(jnp.int32, (B, action_dim), 1)
    one_hot = (lane_a == act_ref[...]).astype(jnp.float32)          # (B, A)
    act_contrib = jnp.dot(one_hot, wact_ref[...],
                          preferred_element_type=jnp.float32)       # (B, H)

    # ---- forward model: phi2_hat = W2(relu(phi1@W1a + one_hot@W1b + b1))+b2
    h_fwd = jnp.maximum(
        jnp.dot(phi1, wfw1p_ref[...], preferred_element_type=jnp.float32)
        + act_contrib + bfw1_ref[...], 0.0)
    phi2_hat = (jnp.dot(h_fwd, wfw2_ref[...],
                        preferred_element_type=jnp.float32) + bfw2_ref[...])

    # mse_loss = 0.5 * sum((phi2_hat - phi2)**2, axis=1)
    diff = phi2_hat - phi2
    mse = 0.5 * jnp.sum(diff * diff, axis=1, keepdims=True)         # (B, 1)

    # ---- inverse model: act_hat = W2(relu(phi1@Wa + phi2@Wb + b1)) + b2 ----
    h_inv = jnp.maximum(
        jnp.dot(phi1, winva_ref[...], preferred_element_type=jnp.float32)
        + jnp.dot(phi2, winvb_ref[...], preferred_element_type=jnp.float32)
        + binv1_ref[...], 0.0)
    act_hat_p = (jnp.dot(h_inv, winv2p_ref[...],
                         preferred_element_type=jnp.float32)
                 + binv2p_ref[...])                                 # (B, OUT)

    # ---- single lane-dense store: act_hat in lanes [0, A), mse in lane A ---
    # (relies on winv2p/binv2p being zero beyond lane action_dim)
    lane = jax.lax.broadcasted_iota(jnp.int32, (B, out_lanes), 1)
    out_ref[...] = jnp.where(lane == action_dim, mse, act_hat_p)


def prepare_params(params):
    """One-time weight re-layout (hoisted out of the per-step hot path)."""
    feature_dim = params["wf"].shape[1]
    action_dim = params["winv2"].shape[1]
    hidden = params["wfw1"].shape[1]
    out_lanes = _round_up(action_dim + 1, 128)

    winv2_p = jnp.zeros((hidden, out_lanes), jnp.float32)
    winv2_p = winv2_p.at[:, :action_dim].set(params["winv2"])
    binv2_p = jnp.zeros((1, out_lanes), jnp.float32)
    binv2_p = binv2_p.at[:, :action_dim].set(params["binv2"])

    return {
        "wf": params["wf"], "bf": params["bf"],
        "wfw1_phi": params["wfw1"][:feature_dim],        # (F, H)
        "wfw1_act": params["wfw1"][feature_dim:],        # (A, H)
        "bfw1": params["bfw1"],
        "wfw2": params["wfw2"], "bfw2": params["bfw2"],
        "winv1_a": params["winv1"][:feature_dim],        # (F, H)
        "winv1_b": params["winv1"][feature_dim:],        # (F, H)
        "binv1": params["binv1"],
        "winv2_p": winv2_p, "binv2_p": binv2_p,
        "action_dim": action_dim,
        "out_lanes": out_lanes,
    }


@functools.partial(jax.jit, static_argnames=())
def icm_forward(s1, act, s2, prepped):
    """Returns (mse_loss [B], act_hat [B, action_dim]).

    `prepped` must come from `prepare_params` (called once at init /
    param-update time, not per step).
    """
    B = s1.shape[0]
    action_dim = prepped["winv2_p"].shape[1] - prepped["binv2_p"].shape[1] + \
        prepped["binv2_p"].shape[1]  # placeholder, overwritten below
    action_dim = prepped["wfw1_act"].shape[0]
    out_lanes = prepped["winv2_p"].shape[1]

    inputs = (
        act.astype(jnp.int32).reshape(B, 1),             # VMEM (B, 1)
        s1, s2,
        prepped["wf"], prepped["bf"],
        prepped["wfw1_phi"], prepped["wfw1_act"], prepped["bfw1"],
        prepped["wfw2"], prepped["bfw2"],
        prepped["winv1_a"], prepped["winv1_b"], prepped["binv1"],
        prepped["winv2_p"], prepped["binv2_p"],
    )

    vmem = pl.BlockSpec(memory_space=pltpu.MemorySpace.VMEM)

    out = pl.pallas_call(
        functools.partial(icm_kernel, action_dim=action_dim),
        out_shape=jax.ShapeDtypeStruct((B, out_lanes), jnp.float32),
        in_specs=[vmem] * len(inputs),
        out_specs=vmem,
    )(*inputs)

    mse = out[:, action_dim]
    act_hat = out[:, :action_dim]
    return mse, act_hat


def init_params(key, obs_dim, feature_dim, action_dim, hidden):
    ks = jax.random.split(key, 7)
    scale = 0.1
    return {
        # feature net: obs_dim -> feature_dim
        "wf": scale * jax.random.normal(ks[0], (obs_dim, feature_dim), jnp.float32),
        "bf": jnp.zeros((1, feature_dim), jnp.float32),
        # forward model: (feature_dim + action_dim) -> hidden -> feature_dim
        "wfw1": scale * jax.random.normal(ks[1], (feature_dim + action_dim, hidden), jnp.float32),
        "bfw1": jnp.zeros((1, hidden), jnp.float32),
        "wfw2": scale * jax.random.normal(ks[2], (hidden, feature_dim), jnp.float32),
        "bfw2": jnp.zeros((1, feature_dim), jnp.float32),
        # inverse model: (2 * feature_dim) -> hidden -> action_dim
        "winv1": scale * jax.random.normal(ks[3], (2 * feature_dim, hidden), jnp.float32),
        "binv1": jnp.zeros((1, hidden), jnp.float32),
        "winv2": scale * jax.random.normal(ks[4], (hidden, action_dim), jnp.float32),
        "binv2": jnp.zeros((1, action_dim), jnp.float32),
    }


if __name__ == "__main__":
    B, obs_dim, feature_dim, action_dim, hidden = 8, 32, 32, 8, 64

    key = jax.random.PRNGKey(0)
    k1, k2, k3, kp = jax.random.split(key, 4)
    s1 = jax.random.normal(k1, (B, obs_dim), jnp.float32)
    s2 = jax.random.normal(k2, (B, obs_dim), jnp.float32)
    act = jax.random.randint(k3, (B,), 0, action_dim, jnp.int32)
    params = init_params(kp, obs_dim, feature_dim, action_dim, hidden)

    # Weight re-layout happens ONCE here, outside the per-step path.
    prepped = jax.tree_util.tree_map(jnp.asarray, prepare_params(params))

    mse_loss, act_hat = icm_forward(s1, act, s2, prepped)
    jax.block_until_ready((mse_loss, act_hat))

    # Pure-JAX reference check (uses the original, un-split parameter layout).
    def ref(s1, act, s2, p):
        phi1 = jnp.maximum(s1 @ p["wf"] + p["bf"], 0.0)
        phi2 = jnp.maximum(s2 @ p["wf"] + p["bf"], 0.0)
        oh = jax.nn.one_hot(act, action_dim, dtype=jnp.float32)
        fi = jnp.concatenate([phi1, oh], axis=1)
        h = jnp.maximum(fi @ p["wfw1"] + p["bfw1"], 0.0)
        phi2_hat = h @ p["wfw2"] + p["bfw2"]
        mse = 0.5 * jnp.sum((phi2_hat - phi2) ** 2, axis=1)
        ii = jnp.concatenate([phi1, phi2], axis=1)
        hi = jnp.maximum(ii @ p["winv1"] + p["binv1"], 0.0)
        return mse, hi @ p["winv2"] + p["binv2"]

    mse_ref, act_ref_out = ref(s1, act, s2, params)
    assert jnp.allclose(mse_loss, mse_ref, atol=1e-5), "mse mismatch"
    assert jnp.allclose(act_hat, act_ref_out, atol=1e-5), "act_hat mismatch"

    print("KERNEL_OK")
</pallas_src>

<mosaic_0001>
module attributes {stable_mosaic.version = 11 : i64} {
  func.func @icm_kernel(%arg0: memref<8x1xi32, #tpu.memory_space<vmem>>, %arg1: memref<8x32xf32, #tpu.memory_space<vmem>>, %arg2: memref<8x32xf32, #tpu.memory_space<vmem>>, %arg3: memref<32x32xf32, #tpu.memory_space<vmem>>, %arg4: memref<1x32xf32, #tpu.memory_space<vmem>>, %arg5: memref<32x64xf32, #tpu.memory_space<vmem>>, %arg6: memref<8x64xf32, #tpu.memory_space<vmem>>, %arg7: memref<1x64xf32, #tpu.memory_space<vmem>>, %arg8: memref<64x32xf32, #tpu.memory_space<vmem>>, %arg9: memref<1x32xf32, #tpu.memory_space<vmem>>, %arg10: memref<32x64xf32, #tpu.memory_space<vmem>>, %arg11: memref<32x64xf32, #tpu.memory_space<vmem>>, %arg12: memref<1x64xf32, #tpu.memory_space<vmem>>, %arg13: memref<64x128xf32, #tpu.memory_space<vmem>>, %arg14: memref<1x128xf32, #tpu.memory_space<vmem>>, %arg15: memref<8x128xf32, #tpu.memory_space<vmem>>) attributes {dimension_semantics = [], scalar_prefetch = 0 : i64, scratch_operands = 0 : i64, tpu.core_type = #tpu.core_type<tc>} {
    %c0 = arith.constant 0 : index
    %c0_0 = arith.constant 0 : index
    %0 = vector.load %arg4[%c0, %c0_0] : memref<1x32xf32, #tpu.memory_space<vmem>>, vector<1x32xf32>
    %c0_1 = arith.constant 0 : index
    %c0_2 = arith.constant 0 : index
    %1 = vector.load %arg1[%c0_1, %c0_2] : memref<8x32xf32, #tpu.memory_space<vmem>>, vector<8x32xf32>
    %c0_3 = arith.constant 0 : index
    %c0_4 = arith.constant 0 : index
    %2 = vector.load %arg3[%c0_3, %c0_4] : memref<32x32xf32, #tpu.memory_space<vmem>>, vector<32x32xf32>
    %cst = arith.constant dense<0.000000e+00> : vector<8x32xf32>
    %3 = tpu.matmul %1, %2, %cst {dimension_numbers = #tpu.dot_dimension_numbers<[1], [0], [0], [1], [0, 0, 1, 1], [], []>} : vector<8x32xf32>, vector<32x32xf32>, vector<8x32xf32> -> vector<8x32xf32>
    %4 = vector.broadcast %0 : vector<1x32xf32> to vector<8x32xf32>
    %5 = arith.addf %3, %4 : vector<8x32xf32>
    %cst_5 = arith.constant 0.000000e+00 : f32
    %6 = vector.broadcast %cst_5 : f32 to vector<8x32xf32>
    %7 = arith.maximumf %5, %6 : vector<8x32xf32>
    %c0_6 = arith.constant 0 : index
    %c0_7 = arith.constant 0 : index
    %8 = vector.load %arg2[%c0_6, %c0_7] : memref<8x32xf32, #tpu.memory_space<vmem>>, vector<8x32xf32>
    %c0_8 = arith.constant 0 : index
    %c0_9 = arith.constant 0 : index
    %9 = vector.load %arg3[%c0_8, %c0_9] : memref<32x32xf32, #tpu.memory_space<vmem>>, vector<32x32xf32>
    %cst_10 = arith.constant dense<0.000000e+00> : vector<8x32xf32>
    %10 = tpu.matmul %8, %9, %cst_10 {dimension_numbers = #tpu.dot_dimension_numbers<[1], [0], [0], [1], [0, 0, 1, 1], [], []>} : vector<8x32xf32>, vector<32x32xf32>, vector<8x32xf32> -> vector<8x32xf32>
    %11 = vector.broadcast %0 : vector<1x32xf32> to vector<8x32xf32>
    %12 = arith.addf %10, %11 : vector<8x32xf32>
    %cst_11 = arith.constant 0.000000e+00 : f32
    %13 = vector.broadcast %cst_11 : f32 to vector<8x32xf32>
    %14 = arith.maximumf %12, %13 : vector<8x32xf32>
    %15 = tpu.iota {dimensions = array<i32: 1>} : vector<8x8xi32>
    %c0_12 = arith.constant 0 : index
    %c0_13 = arith.constant 0 : index
    %16 = vector.load %arg0[%c0_12, %c0_13] : memref<8x1xi32, #tpu.memory_space<vmem>>, vector<8x1xi32>
    %17 = vector.broadcast %16 : vector<8x1xi32> to vector<8x8xi32>
    %18 = arith.cmpi eq, %15, %17 : vector<8x8xi32>
    %19 = arith.extui %18 : vector<8x8xi1> to vector<8x8xi32>
    %20 = arith.sitofp %19 : vector<8x8xi32> to vector<8x8xf32>
    %c0_14 = arith.constant 0 : index
    %c0_15 = arith.constant 0 : index
    %21 = vector.load %arg6[%c0_14, %c0_15] : memref<8x64xf32, #tpu.memory_space<vmem>>, vector<8x64xf32>
    %cst_16 = arith.constant dense<0.000000e+00> : vector<8x64xf32>
    %22 = tpu.matmul %20, %21, %cst_16 {dimension_numbers = #tpu.dot_dimension_numbers<[1], [0], [0], [1], [0, 0, 1, 1], [], []>} : vector<8x8xf32>, vector<8x64xf32>, vector<8x64xf32> -> vector<8x64xf32>
    %c0_17 = arith.constant 0 : index
    %c0_18 = arith.constant 0 : index
    %23 = vector.load %arg5[%c0_17, %c0_18] : memref<32x64xf32, #tpu.memory_space<vmem>>, vector<32x64xf32>
    %cst_19 = arith.constant dense<0.000000e+00> : vector<8x64xf32>
    %24 = tpu.matmul %7, %23, %cst_19 {dimension_numbers = #tpu.dot_dimension_numbers<[1], [0], [0], [1], [0, 0, 1, 1], [], []>} : vector<8x32xf32>, vector<32x64xf32>, vector<8x64xf32> -> vector<8x64xf32>
    %25 = arith.addf %24, %22 : vector<8x64xf32>
    %c0_20 = arith.constant 0 : index
    %c0_21 = arith.constant 0 : index
    %26 = vector.load %arg7[%c0_20, %c0_21] : memref<1x64xf32, #tpu.memory_space<vmem>>, vector<1x64xf32>
    %27 = vector.broadcast %26 : vector<1x64xf32> to vector<8x64xf32>
    %28 = arith.addf %25, %27 : vector<8x64xf32>
    %cst_22 = arith.constant 0.000000e+00 : f32
    %29 = vector.broadcast %cst_22 : f32 to vector<8x64xf32>
    %30 = arith.maximumf %28, %29 : vector<8x64xf32>
    %c0_23 = arith.constant 0 : index
    %c0_24 = arith.constant 0 : index
    %31 = vector.load %arg8[%c0_23, %c0_24] : memref<64x32xf32, #tpu.memory_space<vmem>>, vector<64x32xf32>
    %cst_25 = arith.constant dense<0.000000e+00> : vector<8x32xf32>
    %32 = tpu.matmul %30, %31, %cst_25 {dimension_numbers = #tpu.dot_dimension_numbers<[1], [0], [0], [1], [0, 0, 1, 1], [], []>} : vector<8x64xf32>, vector<64x32xf32>, vector<8x32xf32> -> vector<8x32xf32>
    %c0_26 = arith.constant 0 : index
    %c0_27 = arith.constant 0 : index
    %33 = vector.load %arg9[%c0_26, %c0_27] : memref<1x32xf32, #tpu.memory_space<vmem>>, vector<1x32xf32>
    %34 = vector.broadcast %33 : vector<1x32xf32> to vector<8x32xf32>
    %35 = arith.addf %32, %34 : vector<8x32xf32>
    %36 = arith.subf %35, %14 : vector<8x32xf32>
    %37 = arith.mulf %36, %36 : vector<8x32xf32>
    %cst_28 = arith.constant dense<0.000000e+00> : vector<8xf32>
    %38 = vector.multi_reduction <add>, %37, %cst_28 [1] : vector<8x32xf32> to vector<8xf32>
    %39 = vector.shape_cast %38 : vector<8xf32> to vector<8x1xf32>
    %cst_29 = arith.constant 5.000000e-01 : f32
    %40 = vector.broadcast %cst_29 : f32 to vector<8x1xf32>
    %41 = arith.mulf %40, %39 : vector<8x1xf32>
    %c0_30 = arith.constant 0 : index
    %c0_31 = arith.constant 0 : index
    %42 = vector.load %arg10[%c0_30, %c0_31] : memref<32x64xf32, #tpu.memory_space<vmem>>, vector<32x64xf32>
    %cst_32 = arith.constant dense<0.000000e+00> : vector<8x64xf32>
    %43 = tpu.matmul %7, %42, %cst_32 {dimension_numbers = #tpu.dot_dimension_numbers<[1], [0], [0], [1], [0, 0, 1, 1], [], []>} : vector<8x32xf32>, vector<32x64xf32>, vector<8x64xf32> -> vector<8x64xf32>
    %c0_33 = arith.constant 0 : index
    %c0_34 = arith.constant 0 : index
    %44 = vector.load %arg11[%c0_33, %c0_34] : memref<32x64xf32, #tpu.memory_space<vmem>>, vector<32x64xf32>
    %cst_35 = arith.constant dense<0.000000e+00> : vector<8x64xf32>
    %45 = tpu.matmul %14, %44, %cst_35 {dimension_numbers = #tpu.dot_dimension_numbers<[1], [0], [0], [1], [0, 0, 1, 1], [], []>} : vector<8x32xf32>, vector<32x64xf32>, vector<8x64xf32> -> vector<8x64xf32>
    %46 = arith.addf %43, %45 : vector<8x64xf32>
    %c0_36 = arith.constant 0 : index
    %c0_37 = arith.constant 0 : index
    %47 = vector.load %arg12[%c0_36, %c0_37] : memref<1x64xf32, #tpu.memory_space<vmem>>, vector<1x64xf32>
    %48 = vector.broadcast %47 : vector<1x64xf32> to vector<8x64xf32>
    %49 = arith.addf %46, %48 : vector<8x64xf32>
    %cst_38 = arith.constant 0.000000e+00 : f32
    %50 = vector.broadcast %cst_38 : f32 to vector<8x64xf32>
    %51 = arith.maximumf %49, %50 : vector<8x64xf32>
    %c0_39 = arith.constant 0 : index
    %c0_40 = arith.constant 0 : index
    %52 = vector.load %arg13[%c0_39, %c0_40] : memref<64x128xf32, #tpu.memory_space<vmem>>, vector<64x128xf32>
    %cst_41 = arith.constant dense<0.000000e+00> : vector<8x128xf32>
    %53 = tpu.matmul %51, %52, %cst_41 {dimension_numbers = #tpu.dot_dimension_numbers<[1], [0], [0], [1], [0, 0, 1, 1], [], []>} : vector<8x64xf32>, vector<64x128xf32>, vector<8x128xf32> -> vector<8x128xf32>
    %c0_42 = arith.constant 0 : index
    %c0_43 = arith.constant 0 : index
    %54 = vector.load %arg14[%c0_42, %c0_43] : memref<1x128xf32, #tpu.memory_space<vmem>>, vector<1x128xf32>
    %55 = vector.broadcast %54 : vector<1x128xf32> to vector<8x128xf32>
    %56 = arith.addf %53, %55 : vector<8x128xf32>
    %57 = tpu.iota {dimensions = array<i32: 1>} : vector<8x128xi32>
    %c8_i32 = arith.constant 8 : i32
    %58 = vector.broadcast %c8_i32 : i32 to vector<8x128xi32>
    %59 = arith.cmpi eq, %57, %58 : vector<8x128xi32>
    %60 = vector.shape_cast %41 : vector<8x1xf32> to vector<8x1xf32>
    %61 = vector.broadcast %60 : vector<8x1xf32> to vector<8x128xf32>
    %62 = arith.select %59, %61, %56 : vector<8x128xi1>, vector<8x128xf32>
    %c0_44 = arith.constant 0 : index
    %c0_45 = arith.constant 0 : index
    %63 = vector.load %arg15[%c0_44, %c0_45] : memref<8x128xf32, #tpu.memory_space<vmem>>, vector<8x128xf32>
    tpu.vector_store %arg15[%c0_44, %c0_45], %62 {strides = array<i32>} : memref<8x128xf32, #tpu.memory_space<vmem>>, vector<8x128xf32>,
    return
  }
}

</mosaic_0001>

<bundles_post_ra>
// kernel: icm_forward.1
= control target key start
LH: loop header
LB: loop body
LE: loop exit
PB: predicated region body
PF: predicated region fallthrough
CT: control target
= control target key end

     0   :  { %20 = vsyncpa [#allocation3], 0  ;;  %s1525_s0 = inlined_call_operand.vmem [shape: s32[8,1], index: 0, kind: input, shape index: {}]   ;;  %s1526_s1 = inlined_call_operand.hbm [shape: f32[8,32], index: 1, kind: input, shape index: {}]   ;;  %s1527_s2 = inlined_call_operand.hbm [shape: f32[8,32], index: 2, kind: input, shape index: {}]   ;;  %s1528_s3 = inlined_call_operand.vmem [shape: f32[32,32], index: 3, kind: input, shape index: {}]   ;;  %s1529_s4 = inlined_call_operand.hbm [shape: f32[1,32], index: 4, kind: input, shape index: {}]   ;;  %s1530_s5 = inlined_call_operand.vmem [shape: f32[32,64], index: 5, kind: input, shape index: {}]   ;;  %s1531_s6 = inlined_call_operand.hbm [shape: f32[8,64], index: 6, kind: input, shape index: {}]   ;;  %s1532_s7 = inlined_call_operand.hbm [shape: f32[1,64], index: 7, kind: input, shape index: {}]   ;;  %s1533_s8 = inlined_call_operand.vmem [shape: f32[64,32], index: 8, kind: input, shape index: {}]   ;;  %s1534_s9 = inlined_call_operand.hbm [shape: f32[1,32], index: 9, kind: input, shape index: {}]   ;;  %s1535_s10 = inlined_call_operand.hbm [shape: f32[32,64], index: 10, kind: input, shape index: {}]   ;;  %s1536_s11 = inlined_call_operand.hbm [shape: f32[32,64], index: 11, kind: input, shape index: {}]   ;;  %s1537_s12 = inlined_call_operand.hbm [shape: f32[1,64], index: 12, kind: input, shape index: {}]   ;;  %s1538_s13 = inlined_call_operand.vmem [shape: f32[64,128], index: 13, kind: input, shape index: {}]   ;;  %s1539_s14 = inlined_call_operand.hbm [shape: f32[1,128], index: 14, kind: input, shape index: {}]   ;;  %s1540_s15 = inlined_call_operand.vmem [shape: f32[8,128], index: 15, kind: output, shape index: {}]  }
   0x1   :  { %21 = vsyncpa [#allocation5], 0 }
   0x2   :  { %22 = vsyncpa [#allocation8], 0 }
   0x3   :  { %23 = vsyncpa [#allocation11], 0 }
   0x4   :  { %24 = vsyncpa [#allocation14], 0 }
   0x5   :  { %25 = vsyncpa [#allocation17], 0  ;;  %s1243_s18 = smov [#allocation4]   ;;  %s1244_s20 = smov [#allocation7]  }
   0x6   :  { %s44_s19 = sshll.u32 %s1243_s18, 4  ;;  %s68_s21 = sshll.u32 %s1244_s20, 4  ;;  %s45_s19 = int_to_ptr.vmem [resolvable:$true] %s44_s19  ;;  %s69_s21 = int_to_ptr.vmem [resolvable:$true] %s68_s21 }
   0x7   :  { %s1039_s22 = scalar_lea.vmem %s45_s19, 128  ;;  %p1044_p1 = scmp.lt.s32.totalorder %s45_s19, %s45_s19 }
   0x8   :  { %p1040_p0 = scmp.ne.s32.totalorder %s45_s19, %s1039_s22  ;;  %p1045_p2 = scmp.lt.s32.totalorder %s1039_s22, %s1039_s22 }
   0xa   :  { %p1046_p3 = por %p1045_p2, %p1044_p1 }
   0xc   :  { %p1047_p4 = pnand %p1046_p3, %p1040_p0 }
   0xe   :  { %1050 = shalt.err (!%p1047_p4)
}
   0xf   :  { %47 = dma.hbm_to_vmem [thread:$0]  %s1527_s2, 128, %s45_s19, [#allocation5]  }
  0x10   :  { %s1059_s25 = scalar_lea.vmem %s69_s21, 128  ;;  %p1064_p6 = scmp.lt.s32.totalorder %s69_s21, %s69_s21 }
  0x11   :  { %p1060_p5 = scmp.ne.s32.totalorder %s69_s21, %s1059_s25  ;;  %p1065_p7 = scmp.lt.s32.totalorder %s1059_s25, %s1059_s25 }
  0x13   :  { %p1066_p8 = por %p1065_p7, %p1064_p6 }
  0x15   :  { %p1067_p9 = pnand %p1066_p8, %p1060_p5 }
  0x17   :  { %1070 = shalt.err (!%p1067_p9)
}
  0x18   :  { %71 = dma.hbm_to_vmem [thread:$0]  %s1531_s6, 128, %s69_s21, [#allocation8]  }
  0x19   :  { %s1245_s28 = smov [#allocation10]  }
  0x1a   :  { %s90_s29 = sshll.u32 %s1245_s28, 4  ;;  %s91_s29 = int_to_ptr.vmem [resolvable:$true] %s90_s29 }
  0x1b   :  { %s1079_s30 = scalar_lea.vmem %s91_s29, 16  ;;  %s1083_s16 = scalar_lea.vmem %s91_s29, 32 }
  0x1c   :  { %p1080_p10 = scmp.ne.s32.totalorder %s91_s29, %s1079_s30  ;;  %p1084_p11 = scmp.lt.s32.totalorder %s91_s29, %s91_s29 }
  0x1d   :  { %p1085_p12 = scmp.lt.s32.totalorder %s1083_s16, %s1079_s30 }
  0x1f   :  { %p1086_p13 = por %p1085_p12, %p1084_p11 }
  0x21   :  { %p1087_p0 = pnand %p1086_p13, %p1080_p10 }
  0x23   :  { %1090 = shalt.err (!%p1087_p0)
}
  0x24   :  { %93 = dma.hbm_to_vmem [thread:$0]  %s1534_s9, 16, %s91_s29, [#allocation11]  }
  0x25   :  { %s1246_s18 = smov [#allocation13]   ;;  %s1247_s20 = smov [#allocation2]  }
  0x26   :  { %s111_s19 = sshll.u32 %s1246_s18, 4  ;;  %s34_s6 = sshll.u32 %s1247_s20, 4  ;;  %s112_s19 = int_to_ptr.vmem [resolvable:$true] %s111_s19  ;;  %s35_s6 = int_to_ptr.vmem [resolvable:$true] %s34_s6 }
  0x27   :  { %s1099_s21 = scalar_lea.vmem %s112_s19, 512  ;;  %p1104_p2 = scmp.lt.s32.totalorder %s112_s19, %s112_s19 }
  0x28   :  { %p1100_p1 = scmp.ne.s32.totalorder %s112_s19, %s1099_s21  ;;  %p1105_p3 = scmp.lt.s32.totalorder %s1099_s21, %s1099_s21 }
  0x2a   :  { %p1106_p4 = por %p1105_p3, %p1104_p2 }
  0x2c   :  { %p1107_p5 = pnand %p1106_p4, %p1100_p1 }
  0x2e   :  { %1110 = shalt.err (!%p1107_p5)
}
  0x2f   :  { %s1248_s22 = smov 128   ;;  %s1249_s23 = smov 8  }
  0x30   :  { %117 = dma.hbm_to_vmem [thread:$0]  %s1536_s11, 512, %s112_s19, [#allocation14], %s1248_s22, %s1248_s22, %s1249_s23  }
  0x31   :  { %s1119_s9 = scalar_lea.vmem %s35_s6, 128  ;;  %p1124_p7 = scmp.lt.s32.totalorder %s35_s6, %s35_s6 }
  0x32   :  { %p1120_p6 = scmp.ne.s32.totalorder %s35_s6, %s1119_s9  ;;  %p1125_p8 = scmp.lt.s32.totalorder %s1119_s9, %s1119_s9 }
  0x34   :  { %p1126_p9 = por %p1125_p8, %p1124_p7 }
  0x36   :  { %p1127_p10 = pnand %p1126_p9, %p1120_p6 }
  0x38   :  { %1130 = shalt.err (!%p1127_p10)
}
  0x39   :  { %37 = dma.hbm_to_vmem [thread:$0]  %s1526_s1, 128, %s35_s6, [#allocation3]  }
  0x3a   :  { %s1250_s28 = smov [#allocation6]   ;;  %s1251_s30 = smov [#allocation9]  }
  0x3b   :  { %s56_s29 = sshll.u32 %s1250_s28, 4  ;;  %s78_s16 = sshll.u32 %s1251_s30, 4  ;;  %s57_s29 = int_to_ptr.vmem [resolvable:$true] %s56_s29  ;;  %s79_s16 = int_to_ptr.vmem [resolvable:$true] %s78_s16 }
  0x3c   :  { %s1139_s2 = scalar_lea.vmem %s57_s29, 16  ;;  %s1143_s11 = scalar_lea.vmem %s57_s29, 32 }
  0x3d   :  { %p1140_p11 = scmp.ne.s32.totalorder %s57_s29, %s1139_s2  ;;  %p1144_p12 = scmp.lt.s32.totalorder %s57_s29, %s57_s29 }
  0x3e   :  { %p1145_p13 = scmp.lt.s32.totalorder %s1143_s11, %s1139_s2 }
  0x40   :  { %p1146_p0 = por %p1145_p13, %p1144_p12 }
  0x42   :  { %p1147_p1 = pnand %p1146_p0, %p1140_p11 }
  0x44   :  { %1150 = shalt.err (!%p1147_p1)
}
  0x45   :  { %59 = dma.hbm_to_vmem [thread:$0]  %s1529_s4, 16, %s57_s29, [#allocation5]  }
  0x46   :  { %s1159_s19 = scalar_lea.vmem %s79_s16, 16  ;;  %s1163_s1 = scalar_lea.vmem %s79_s16, 32 }
  0x47   :  { %p1160_p2 = scmp.ne.s32.totalorder %s79_s16, %s1159_s19  ;;  %p1164_p3 = scmp.lt.s32.totalorder %s79_s16, %s79_s16 }
  0x48   :  { %p1165_p4 = scmp.lt.s32.totalorder %s1163_s1, %s1159_s19 }
  0x4a   :  { %p1166_p5 = por %p1165_p4, %p1164_p3 }
  0x4c   :  { %p1167_p6 = pnand %p1166_p5, %p1160_p2 }
  0x4e   :  { %1170 = shalt.err (!%p1167_p6)
}
  0x4f   :  { %81 = dma.hbm_to_vmem [thread:$0]  %s1532_s7, 16, %s79_s16, [#allocation8]  }
  0x50   :  { %s1252_s21 = smov [#allocation12]   ;;  %s1253_s25 = smov [#allocation15]  }
  0x51   :  { %s99_s24 = sshll.u32 %s1252_s21, 4  ;;  %s124_s9 = sshll.u32 %s1253_s25, 4  ;;  %s100_s24 = int_to_ptr.vmem [resolvable:$true] %s99_s24  ;;  %s125_s9 = int_to_ptr.vmem [resolvable:$true] %s124_s9 }
  0x52   :  { %s1179_s26 = scalar_lea.vmem %s100_s24, 512  ;;  %p1184_p8 = scmp.lt.s32.totalorder %s100_s24, %s100_s24 }
  0x53   :  { %p1180_p7 = scmp.ne.s32.totalorder %s100_s24, %s1179_s26  ;;  %p1185_p9 = scmp.lt.s32.totalorder %s1179_s26, %s1179_s26 }
  0x55   :  { %p1186_p10 = por %p1185_p9, %p1184_p8 }
  0x57   :  { %p1187_p11 = pnand %p1186_p10, %p1180_p7 }
  0x59   :  { %1190 = shalt.err (!%p1187_p11)
}
  0x5a   :  { %105 = dma.hbm_to_vmem [thread:$0]  %s1535_s10, 512, %s100_s24, [#allocation11], %s1248_s22, %s1248_s22, %s1249_s23  }
  0x5b   :  { %s1199_s7 = scalar_lea.vmem %s125_s9, 16  ;;  %s1203_s28 = scalar_lea.vmem %s125_s9, 32 }
  0x5c   :  { %p1200_p12 = scmp.ne.s32.totalorder %s125_s9, %s1199_s7  ;;  %p1204_p13 = scmp.lt.s32.totalorder %s125_s9, %s125_s9 }
  0x5d   :  { %p1205_p0 = scmp.lt.s32.totalorder %s1203_s28, %s1199_s7 }
  0x5f   :  { %p1206_p1 = por %p1205_p0, %p1204_p13 }
  0x61   :  { %p1207_p2 = pnand %p1206_p1, %p1200_p12 }
  0x63   :  { %1210 = shalt.err (!%p1207_p2)
}
  0x64   :  { %127 = dma.hbm_to_vmem [thread:$0]  %s1537_s12, 16, %s125_s9, [#allocation14]  }
  0x65   :  { %s1254_s16 = smov [#allocation16]  }
  0x66   :  { %s136_s2 = sshll.u32 %s1254_s16, 4  ;;  %s137_s2 = int_to_ptr.vmem [resolvable:$true] %s136_s2 }
  0x67   :  { %s1219_s11 = scalar_lea.vmem %s137_s2, 16  ;;  %s1223_s17 = scalar_lea.vmem %s137_s2, 32 }
  0x68   :  { %p1220_p3 = scmp.ne.s32.totalorder %s137_s2, %s1219_s11  ;;  %p1224_p4 = scmp.lt.s32.totalorder %s137_s2, %s137_s2 }
  0x69   :  { %p1225_p5 = scmp.lt.s32.totalorder %s1223_s17, %s1219_s11 }
  0x6b   :  { %p1226_p6 = por %p1225_p5, %p1224_p4 }
  0x6d   :  { %p1227_p7 = pnand %p1226_p6, %p1220_p3 }
  0x6f   :  { %1230 = shalt.err (!%p1227_p7)
}
  0x70   :  { %139 = dma.hbm_to_vmem [thread:$0]  %s1539_s14, 16, %s137_s2, [#allocation17]  }
  0x71   :  { %1231 = dma.done.wait [#allocation3], 128  }
  0x72   :  { %1232 = vsyncadd [#allocation3], 4294967168 }
  0x73   :  { %1233 = dma.done.wait [#allocation5], 144  }
  0x74   :  { %1234 = vsyncadd [#allocation5], 4294967152 }
  0x75   :  { %1235 = dma.done.wait [#allocation8], 144  }
  0x76   :  { %1236 = vsyncadd [#allocation8], 4294967152 }
  0x77   :  { %1237 = dma.done.wait [#allocation11], 528  }
  0x78   :  { %1238 = vsyncadd [#allocation11], 4294966768 }
  0x79   :  { %1239 = dma.done.wait [#allocation14], 528  }
  0x7a   :  { %1240 = vsyncadd [#allocation14], 4294966768 }
  0x7b   :  { %1241 = dma.done.wait [#allocation17], 16  }
  0x7c   :  { %1242 = vsyncadd [#allocation17], 4294967280  ;;  %v1255_v0 = vmov 0.0   ;;  %vm1256_vm0 = vmmov 0   ;;  %v1257_v1 = vmov 0   ;;  %v175_v2 = vld [vmem:[%s1528_s3 + $0x18] sm:$0xff]  ;;  %v332_v14 = vlaneseq }
  0x7d   :  { %917 = vmatprep.subr.mxu1 %v1255_v0  ;;  %925 = vmatprep.mubr.msk.f32.mxu1 %vm1256_vm0, %v1255_v0  ;;  %v174_v3 = vld [vmem:[%s1528_s3 + $0x10] sm:$0xff]  ;;  %v173_v4 = vld [vmem:[%s1528_s3 + $0x8] sm:$0xff]  ;;  %v334_v5 = vld [vmem:[%s1525_s0] sm:$0xff]  ;;  %vm182_vm1 = vcmask 261120   ;;  %vm342_vm2 = vcmask 64512   ;;  %vm517_vm4 = vcmask 523264  }
  0x7e   :  { %1030 = vset.pattern.permute.xlu0 %v1257_v1  ;;  %939 = vmatprep.subr.mxu0 %v1255_v0  ;;  %v172_v6 = vld [vmem:[%s1528_s3] sm:$0xff]  ;;  %v257_v8 = vld [vmem:[#allocation4] sm:$0xff]  ;;  %v419_v9 = vld [vmem:[%s1530_s5 + $0x18] sm:$0xff]  ;;  %v1426_v15 = vand.u32 127, %v332_v14 }
  0x7f   :  { %941 = vmatprep.mubr.msk.f32.mxu0 %vm1256_vm0, %v1255_v0  ;;  %918 = vmatpush3.msra.mxu1 %v175_v2  ;;  %v171_v7 = vld [vmem:[#allocation2] sm:$0xff]  ;;  %v418_v10 = vld [vmem:[%s1530_s5 + $0x10] sm:$0xff]  ;;  %v417_v11 = vld [vmem:[%s1530_s5 + $0x8] sm:$0xff] }
  0x80   :  { %919 = vmatprep.subr.mxu1 %v1255_v0  ;;  %336 = vperm.xlu0 %1030, %v334_v5   ;;  %v341_v12 = vld [vmem:[#allocation7] sm:$0xff]  ;;  %v416_v13 = vld [vmem:[%s1530_s5] sm:$0xff]  ;;  %v507_v20 = vld [vmem:[%s1533_s8 + $0x28] sm:$0xff]  ;;  %vm845_vm5 = vcmp.eq.s32.totalorder %v1426_v15, 8 }
  0x81   :  { %920 = vmatpush3.msra.mxu1 %v174_v3  ;;  %940 = vmatpush3.msra.mxu0 %v341_v12  ;;  %v509_v17 = vld [vmem:[%s1533_s8 + $0x38] sm:$0xff]  ;;  %v508_v19 = vld [vmem:[%s1533_s8 + $0x30] sm:$0xff]  ;;  %v506_v21 = vld [vmem:[%s1533_s8 + $0x20] sm:$0xff] }
  0x82   :  { %921 = vmatprep.subr.mxu1 %v1255_v0  ;;  %955 = vmatprep.subr.mxu0 %v1255_v0  ;;  %v505_v22 = vld [vmem:[%s1533_s8 + $0x18] sm:$0xff]  ;;  %v858_v23 = vld [vmem:[#allocation6] ss:$0 sm:$0xff]  ;;  %v602_v30 = vld [vmem:[#allocation13 + $0x8] sm:$0xff] }
  0x83   :  { %922 = vmatpush3.msra.mxu1 %v173_v4  ;;  %v604_v28 = vld [vmem:[#allocation13 + $0x18] sm:$0xff]  ;;  %v603_v29 = vld [vmem:[#allocation13 + $0x10] sm:$0xff]  ;;  %v601_v33 = vld [vmem:[#allocation13] sm:$0xff] }
  0x84   :  { %923 = vmatprep.subr.mxu1 %v1255_v0  ;;  %v600_v36 = vld [vmem:[#allocation12 + $0x18] sm:$0xff]  ;;  %v599_v37 = vld [vmem:[#allocation12 + $0x10] sm:$0xff]  ;;  %v598_v38 = vld [vmem:[#allocation12 + $0x8] sm:$0xff] }
  0x85   :  { %924 = vmatpush3.msra.mxu1 %v172_v6  ;;  %v597_v39 = vld [vmem:[#allocation12] sm:$0xff]  ;;  %v504_v40 = vld [vmem:[%s1533_s8 + $0x10] sm:$0xff]  ;;  %v503_v41 = vld [vmem:[%s1533_s8 + $0x8] sm:$0xff] }
  0x86   :  { %926 = vmatmul.mubr.msk.f32.vlgmr.msra.gmra.mxu1 %vm182_vm1, %v171_v7  ;;  %928 = vmatprep.subr.mxu1 %v1255_v0  ;;  %v502_v42 = vld [vmem:[%s1533_s8] sm:$0xff]  ;;  %v864_v46 = vld [vmem:[#allocation9] ss:$0 sm:$0xff]  ;;  %v763_v52 = vld [vmem:[%s1538_s13 + $0x30] sm:$0xff] }
  0x87   :  { %929 = vmatpush3.msra.mxu1 %v175_v2  ;;  %936 = vmatprep.mubr.msk.f32.mxu1 %vm1256_vm0, %v1255_v0  ;;  %v764_v51 = vld [vmem:[%s1538_s13 + $0x38] sm:$0xff]  ;;  %v762_v54 = vld [vmem:[%s1538_s13 + $0x28] sm:$0xff]  ;;  %v761_v56 = vld [vmem:[%s1538_s13 + $0x20] sm:$0xff] }
  0x88   :  { %930 = vmatprep.subr.mxu1 %v1255_v0  ;;  %v760_v57 = vld [vmem:[%s1538_s13 + $0x18] sm:$0xff]  ;;  %v759_v58 = vld [vmem:[%s1538_s13 + $0x10] sm:$0xff]  ;;  %v758_v62 = vld [vmem:[%s1538_s13 + $0x8] sm:$0xff] }
  0x89   :  { %931 = vmatpush3.msra.mxu1 %v174_v3  ;;  %v869_v60 = vld [vmem:[#allocation15] ss:$0 sm:$0xff]  ;;  %v757_v2 = vld [vmem:[%s1538_s13] sm:$0xff] }
  0x8a   :  { %932 = vmatprep.subr.mxu1 %v1255_v0 }
  0x8b   :  { %933 = vmatpush3.msra.mxu1 %v173_v4  ;;  %v865_v4 = vld [vmem:[#allocation10] ss:$0 sm:$0xff] }
  0x8c   :  { %934 = vmatprep.subr.mxu1 %v1255_v0 }
  0x8d   :  { %935 = vmatpush3.msra.mxu1 %v172_v6 }
  0x8e   :  { %937 = vmatmul.mubr.msk.f32.vlgmr.msra.gmra.mxu1 %vm182_vm1, %v257_v8  ;;  %944 = vmatprep.subr.mxu1 %v1255_v0 }
  0x8f   :  { %945 = vmatpush3.msra.mxu1 %v419_v9  ;;  %952 = vmatprep.mubr.msk.f32.mxu1 %vm1256_vm0, %v1255_v0 }
  0x90   :  { %946 = vmatprep.subr.mxu1 %v1255_v0 }
  0x91   :  { %947 = vmatpush3.msra.mxu1 %v418_v10 }
  0x92   :  { %948 = vmatprep.subr.mxu1 %v1255_v0 }
  0x93   :  { %949 = vmatpush3.msra.mxu1 %v417_v11 }
  0x94   :  { %950 = vmatprep.subr.mxu1 %v1255_v0 }
  0x95   :  { %951 = vmatpush3.msra.mxu1 %v416_v13  ;;  %v870_v13 = vld [vmem:[#allocation16] ss:$0 sm:$0xff] }
  0x96   :  { %974 = vmatprep.subr.mxu1 %v1255_v0 }
  0xfb   :  { %v337_v16 = vpop.permute.xlu0 %336 }
  0xfc   :  { %vm338_vm3 = vcmp.eq.s32.totalorder %v1426_v15, %v337_v16 }
  0xfd   :  { %v861_v18 = vsel %vm338_vm3, 1.0, %v1255_v0 }
  0xfe   :  { %942 = vmatmul.mubr.msk.f32.vlgmr.msra.gmra.mxu0 %vm342_vm2, %v861_v18 }
  0xff   :  { %956 = vmatpush3.msra.mxu0 %v509_v17  ;;  %971 = vmatprep.mubr.msk.f32.mxu0 %vm1256_vm0, %v1255_v0 }
 0x100   :  { %957 = vmatprep.subr.mxu0 %v1255_v0 }
 0x101   :  { %958 = vmatpush3.msra.mxu0 %v508_v19 }
 0x102   :  { %959 = vmatprep.subr.mxu0 %v1255_v0 }
 0x103   :  { %960 = vmatpush3.msra.mxu0 %v507_v20 }
 0x104   :  { %961 = vmatprep.subr.mxu0 %v1255_v0 }
 0x105   :  { %962 = vmatpush3.msra.mxu0 %v506_v21 }
 0x106   :  { %963 = vmatprep.subr.mxu0 %v1255_v0 }
 0x107   :  { %964 = vmatpush3.msra.mxu0 %v505_v22 }
 0x108   :  { %965 = vmatprep.subr.mxu0 %v1255_v0 }
 0x109   :  { %966 = vmatpush3.msra.mxu0 %v504_v40 }
 0x10a   :  { %967 = vmatprep.subr.mxu0 %v1255_v0 }
 0x10b   :  { %968 = vmatpush3.msra.mxu0 %v503_v41 }
 0x10c   :  { %969 = vmatprep.subr.mxu0 %v1255_v0 }
 0x10d   :  { %970 = vmatpush3.msra.mxu0 %v502_v42 }
 0x10e   :  { %996 = vmatprep.subr.mxu0 %v1255_v0 }
 0x146   :  { %v252_v24 = vpop.f32.mrf.mxu1 }
 0x147   :  { %v253_v25 = vadd.f32 %v858_v23, %v252_v24 }
 0x148   :  { %v927_v26 = vpop.f32.mrf.mxu1 }
 0x149   :  { %v256_v27 = vmax.f32 %v253_v25, 0.0 }
 0x14b   :  { %953 = vmatmul.mubr.msk.f32.vlgmr.msra.gmra.mxu1 %vm182_vm1, %v256_v27 }
 0x14c   :  { %975 = vmatpush3.msra.mxu1 %v604_v28  ;;  %982 = vmatprep.mubr.msk.f32.mxu1 %vm1256_vm0, %v1255_v0 }
 0x14d   :  { %976 = vmatprep.subr.mxu1 %v1255_v0 }
 0x14e   :  { %977 = vmatpush3.msra.mxu1 %v603_v29  ;;  %v327_v31 = vpop.f32.mrf.mxu1 }
 0x14f   :  { %v1456_v32 = vadd.f32 %v858_v23, %v327_v31  ;;  %978 = vmatprep.subr.mxu1 %v1255_v0 }
 0x150   :  { %979 = vmatpush3.msra.mxu1 %v602_v30  ;;  %v938_v34 = vpop.f32.mrf.mxu1 }
 0x151   :  { %v331_v35 = vmax.f32 %v1456_v32, 0.0  ;;  %980 = vmatprep.subr.mxu1 %v1255_v0 }
 0x152   :  { %981 = vmatpush3.msra.mxu1 %v601_v33 }
 0x153   :  { %985 = vmatprep.subr.mxu1 %v1255_v0  ;;  %983 = vmatmul.mubr.msk.f32.vlgmr.msra.gmra.mxu1 %vm182_vm1, %v331_v35 }
 0x154   :  { %986 = vmatpush3.msra.mxu1 %v600_v36  ;;  %993 = vmatprep.mubr.msk.f32.mxu1 %vm1256_vm0, %v1255_v0 }
 0x155   :  { %987 = vmatprep.subr.mxu1 %v1255_v0 }
 0x156   :  { %988 = vmatpush3.msra.mxu1 %v599_v37 }
 0x157   :  { %989 = vmatprep.subr.mxu1 %v1255_v0 }
 0x158   :  { %990 = vmatpush3.msra.mxu1 %v598_v38 }
 0x159   :  { %991 = vmatprep.subr.mxu1 %v1255_v0 }
 0x15a   :  { %992 = vmatpush3.msra.mxu1 %v597_v39 }
 0x15b   :  { %994 = vmatmul.mubr.msk.f32.vlgmr.msra.gmra.mxu1 %vm182_vm1, %v256_v27 }
 0x1be   :  { %v412_v43 = vpop.f32.mrf.mxu0 }
 0x1c0   :  { %v943_v44 = vpop.f32.mrf.mxu0 }
 0x20b   :  { %v489_v45 = vpop.f32.mrf.mxu1 }
 0x20c   :  { %v490_v47 = vadd.f32 %v489_v45, %v412_v43 }
 0x20d   :  { %v954_v48 = vpop.f32.mrf.mxu1 }
 0x20e   :  { %v500_v49 = vadd.f32 %v864_v46, %v490_v47 }
 0x210   :  { %v501_v50 = vmax.f32 %v500_v49, 0.0 }
 0x212   :  { %972 = vmatmul.mubr.msk.f32.vlgmr.msra.gmra.mxu0 %vm517_vm4, %v501_v50 }
 0x213   :  { %997 = vmatpush3.msra.mxu0 %v764_v51  ;;  %v674_v53 = vpop.f32.mrf.mxu1  ;;  %1012 = vmatprep.mubr.msk.f32.mxu0 %vm1256_vm0, %v1255_v0 }
 0x214   :  { %998 = vmatprep.subr.mxu0 %v1255_v0 }
 0x215   :  { %999 = vmatpush3.msra.mxu0 %v763_v52  ;;  %v984_v55 = vpop.f32.mrf.mxu1 }
 0x216   :  { %1000 = vmatprep.subr.mxu0 %v1255_v0 }
 0x217   :  { %1001 = vmatpush3.msra.mxu0 %v762_v54 }
 0x218   :  { %1002 = vmatprep.subr.mxu0 %v1255_v0 }
 0x219   :  { %1003 = vmatpush3.msra.mxu0 %v761_v56 }
 0x21a   :  { %1004 = vmatprep.subr.mxu0 %v1255_v0 }
 0x21b   :  { %v744_v59 = vpop.f32.mrf.mxu1  ;;  %1005 = vmatpush3.msra.mxu0 %v760_v57 }
 0x21c   :  { %v745_v61 = vadd.f32 %v744_v59, %v674_v53  ;;  %1006 = vmatprep.subr.mxu0 %v1255_v0 }
 0x21d   :  { %v995_v63 = vpop.f32.mrf.mxu1  ;;  %1007 = vmatpush3.msra.mxu0 %v759_v58 }
 0x21e   :  { %v755_v1 = vadd.f32 %v869_v60, %v745_v61  ;;  %1008 = vmatprep.subr.mxu0 %v1255_v0 }
 0x21f   :  { %1009 = vmatpush3.msra.mxu0 %v758_v62 }
 0x220   :  { %v756_v3 = vmax.f32 %v755_v1, 0.0  ;;  %1010 = vmatprep.subr.mxu0 %v1255_v0 }
 0x221   :  { %1011 = vmatpush3.msra.mxu0 %v757_v2 }
 0x222   :  { %1013 = vmatmul.mubr.msk.f32.vlgmr.msra.gmra.mxu0 %vm517_vm4, %v756_v3 }
 0x2d2   :  { %v587_v5 = vpop.f32.mrf.mxu0 }
 0x2d3   :  { %v588_v6 = vadd.f32 %v865_v4, %v587_v5 }
 0x2d4   :  { %v973_v7 = vpop.f32.mrf.mxu0 }
 0x2d5   :  { %v591_v8 = vsub.f32 %v588_v6, %v331_v35 }
 0x2d7   :  { %v592_v9 = vmul.f32 %v591_v8, %v591_v8 }
 0x2d9   :  { %v593_v10 = vsel %vm182_vm1, %v592_v9, 0.0 }
 0x2da   :  { %594 = vadd.xlane.f32.xlu0 %v593_v10 }
 0x2e2   :  { %v841_v11 = vpop.f32.mrf.mxu0 }
 0x2e3   :  { %v842_v14 = vadd.f32 %v870_v13, %v841_v11 }
 0x2e4   :  { %v1014_v12 = vpop.f32.mrf.mxu0 }
 0x363   :  { %v595_v0 = vpop.xlane.xlu0 %594 }
 0x364   :  { %v596_v16 = vmul.f32 0.5, %v595_v0 }
 0x366   :  { %v846_v17 = vsel %vm845_vm5, %v596_v16, %v842_v14 }
 0x367   :  { %847 = vst [vmem:[%s1540_s15] sm:$0xff] %v846_v17 }
 0x368   :  { %852 = vsyncpa [#allocation3], 1 }
 0x369   :  { %853 = vsyncpa [#allocation5], 1 }
 0x36a   :  { %854 = vsyncpa [#allocation8], 1 }
 0x36b   :  { %855 = vsyncpa [#allocation11], 1 }
 0x36c   :  { %856 = vsyncpa [#allocation14], 1 }
 0x36d   :  { %857 = vsyncpa [#allocation17], 1 }

</bundles_post_ra>
